<compile_context>
chip_gen: v6e
topology: v6e:2x2x1
jax: 0.10.0
libtpu: 0.0.40
codegen_flags: <defaults>
</compile_context>

<pallas_src>
import jax
import jax.numpy as jnp
from jax.experimental import pallas as pl
from jax.experimental.pallas import tpu as pltpu


def _round_up(x, m):
    return (x + m - 1) // m * m


def dqn_kernel(x_ref, w1_ref, b1_ref, w2_ref, b2_ref, wa_ref, ba_ref, out_ref):
    """Fused IESE-MLP stand-in + action head + softmax.

    x_ref  : (TB, Dp)   bf16   fused [ego | flat(other) | eva] obs (zero-padded)
    w1_ref : (Dp, H1)   bf16   b1_ref : (1, H1)  f32
    w2_ref : (H1, H2)   bf16   b2_ref : (1, H2)  f32     (H2 == nr_hidden_units)
    wa_ref : (H2, Ap)   bf16   ba_ref : (1, Ap)  f32     (padded cols hold -1e30)
    out_ref: (TB, Ap)   softmax probabilities (valid in the first `outputs` cols)
    """
    # fc_net (IESE stand-in): bf16 MXU inputs, f32 accumulation, f32 bias/ReLU.
    h1 = jnp.dot(x_ref[...], w1_ref[...],
                 preferred_element_type=jnp.float32) + b1_ref[...]
    h1 = jnp.maximum(h1, 0.0).astype(w2_ref.dtype)

    h2 = jnp.dot(h1, w2_ref[...],
                 preferred_element_type=jnp.float32) + b2_ref[...]
    h2 = jnp.maximum(h2, 0.0).astype(wa_ref.dtype)

    # action_head: the padded bias columns carry -1e30, so their exp()
    # underflows to exactly 0 (no iota/where needed, no inf arithmetic).
    logits = jnp.dot(h2, wa_ref[...],
                     preferred_element_type=jnp.float32) + ba_ref[...]

    # F.softmax over dim=1 — exact f32 division so rows sum to 1.
    m = jnp.max(logits, axis=-1, keepdims=True)
    e = jnp.exp(logits - m)
    denom = jnp.sum(e, axis=-1, keepdims=True)
    out_ref[...] = (e / denom).astype(out_ref.dtype)


def dqn_forward(ego, oth, eva, params, *, block_b=1024, out_dtype=jnp.bfloat16):
    """Wrapper: layout plumbing (concat / flatten / pad) in JAX, math in-kernel."""
    B = ego.shape[0]
    w1, b1 = params["w1"], params["b1"]
    w2, b2 = params["w2"], params["b2"]
    wa, ba = params["wa"], params["ba"]
    num_actions = params["num_actions"]
    d_pad, _ = w1.shape
    a_pad = wa.shape[1]
    compute_dtype = w1.dtype

    # Single fused input: [ego | flatten(other) | eva], zero-padded to w1's K
    # (the padded w1 rows are zero, so this is numerically identical to the
    # original per-part concat @ w1).
    x = jnp.concatenate(
        [ego.reshape(B, -1), oth.reshape(B, -1), eva.reshape(B, -1)], axis=1
    ).astype(compute_dtype)
    d_in = x.shape[1]
    if d_in < d_pad:
        x = jnp.pad(x, ((0, 0), (0, d_pad - d_in)))

    # Batch tiling: one full block for tiny batches; otherwise at least 2 tiles
    # (feeds both v7x TensorCores) of up to block_b rows, multiples of 8.
    if B <= 8:
        tb = B
    else:
        tb = min(block_b, _round_up(pl.cdiv(B, 2), 8))
    pad_b = (-B) % tb
    if pad_b:
        x = jnp.pad(x, ((0, pad_b), (0, 0)))
    bp = B + pad_b
    grid = (bp // tb,)

    def resident(arr):
        # Constant block index -> stays VMEM-resident across grid iterations.
        return pl.BlockSpec(arr.shape, lambda i: (0, 0))

    out = pl.pallas_call(
        dqn_kernel,
        out_shape=jax.ShapeDtypeStruct((bp, a_pad), out_dtype),
        grid=grid,
        in_specs=[
            pl.BlockSpec((tb, d_pad), lambda i: (i, 0)),
            resident(w1), resident(b1),
            resident(w2), resident(b2),
            resident(wa), resident(ba),
        ],
        out_specs=pl.BlockSpec((tb, a_pad), lambda i: (i, 0)),
        compiler_params=pltpu.CompilerParams(
            dimension_semantics=("parallel",)),
    )(x, w1, b1, w2, b2, wa, ba)

    # Drop batch padding and the zero-probability padded action columns.
    return out[:B, :num_actions]


def init_params(key, e_dim, oth_dim, eva_dim, h1, nr_hidden_units, outputs,
                compute_dtype=jnp.bfloat16):
    """Deterministic synthetic parameter init (PyTorch-Linear-like scaling)."""
    ks = jax.random.split(key, 6)

    def lin(kw, kb, fan_in, fan_out):
        bound = 1.0 / jnp.sqrt(jnp.float32(fan_in))
        w = jax.random.uniform(kw, (fan_in, fan_out), jnp.float32, -bound, bound)
        b = jax.random.uniform(kb, (1, fan_out), jnp.float32, -bound, bound)
        return w, b

    d_in = e_dim + oth_dim + eva_dim
    d_pad = _round_up(d_in, 8)          # fused-K padding for the first layer
    a_pad = _round_up(outputs, 128)     # lane-dense action head

    w1, b1 = lin(ks[0], ks[1], d_in, h1)
    w2, b2 = lin(ks[2], ks[3], h1, nr_hidden_units)
    wa, ba = lin(ks[4], ks[5], nr_hidden_units, outputs)

    # Fused first layer: zero rows for the padded input columns.
    w1_pad = jnp.zeros((d_pad, h1), jnp.float32).at[:d_in].set(w1)

    # Lane-dense action head with the softmax mask baked into the bias:
    # padded logits become -1e30 (finite), so exp() is exactly 0.
    wa_pad = jnp.zeros((nr_hidden_units, a_pad), jnp.float32).at[:, :outputs].set(wa)
    ba_pad = jnp.full((1, a_pad), -1e30, jnp.float32).at[:, :outputs].set(ba)

    return dict(
        w1=w1_pad.astype(compute_dtype), b1=b1,     # biases stay f32 (added post-acc)
        w2=w2.astype(compute_dtype), b2=b2,
        wa=wa_pad.astype(compute_dtype), ba=ba_pad,
        num_actions=outputs,
    )


if __name__ == "__main__":
    # Small shapes consistent with the module's constructor arguments.
    B = 2                       # batch
    input_ego_state_shape = 4   # ego feature dim
    input_oth_state_shape = 6   # per-step other-agents feature dim
    input_eva_state_shape = 5   # evaluation/extra feature dim
    max_history_length = 8      # history length for other-agents states
    outputs = 5                 # number of discrete actions
    hidden1 = 128               # lane-dense stand-in hidden sizes
    nr_hidden_units = 128       # fc_net.nr_hidden_units (stand-in)

    key = jax.random.PRNGKey(0)
    k_ego, k_oth, k_eva, k_par = jax.random.split(key, 4)

    ego = jax.random.normal(k_ego, (B, input_ego_state_shape), jnp.float32)
    oth = jax.random.normal(k_oth, (B, max_history_length, input_oth_state_shape),
                            jnp.float32)
    eva = jax.random.normal(k_eva, (B, input_eva_state_shape), jnp.float32)

    params = init_params(k_par,
                         input_ego_state_shape,
                         max_history_length * input_oth_state_shape,
                         input_eva_state_shape,
                         hidden1, nr_hidden_units, outputs)

    probs = dqn_forward(ego, oth, eva, params)
    jax.block_until_ready(probs)

    # Sanity: rows are valid probability distributions. Softmax is computed
    # with exact f32 division; the only error left is the bf16 output cast
    # (<= ~2e-3 per row sum), so 1e-2 is a comfortable tolerance.
    assert probs.shape == (B, outputs)
    row_sums = jnp.sum(probs.astype(jnp.float32), axis=-1)
    assert bool(jnp.all(jnp.abs(row_sums - 1.0) < 1e-2))
    assert bool(jnp.all(probs.astype(jnp.float32) >= 0.0))

    print("KERNEL_OK")
</pallas_src>

<mosaic_0001>
module attributes {stable_mosaic.version = 11 : i64} {
  func.func @dqn_kernel(%arg0: i32, %arg1: memref<2x64xbf16, #tpu.memory_space<vmem>>, %arg2: memref<64x128xbf16, #tpu.memory_space<vmem>>, %arg3: memref<1x128xf32, #tpu.memory_space<vmem>>, %arg4: memref<128x128xbf16, #tpu.memory_space<vmem>>, %arg5: memref<1x128xf32, #tpu.memory_space<vmem>>, %arg6: memref<128x128xbf16, #tpu.memory_space<vmem>>, %arg7: memref<1x128xf32, #tpu.memory_space<vmem>>, %arg8: memref<2x128xbf16, #tpu.memory_space<vmem>>) attributes {dimension_semantics = [#tpu.dimension_semantics<parallel>], iteration_bounds = array<i64: 1>, scalar_prefetch = 0 : i64, scratch_operands = 0 : i64, tpu.core_type = #tpu.core_type<tc>, window_params = [{transform_indices = @transform_0, window_bounds = array<i64: 2, 64>}, {pipeline_mode = #tpu.pipeline_mode<synchronous>, transform_indices = @transform_1, window_bounds = array<i64: 64, 128>}, {pipeline_mode = #tpu.pipeline_mode<synchronous>, transform_indices = @transform_2, window_bounds = array<i64: 1, 128>}, {pipeline_mode = #tpu.pipeline_mode<synchronous>, transform_indices = @transform_3, window_bounds = array<i64: 128, 128>}, {pipeline_mode = #tpu.pipeline_mode<synchronous>, transform_indices = @transform_4, window_bounds = array<i64: 1, 128>}, {pipeline_mode = #tpu.pipeline_mode<synchronous>, transform_indices = @transform_5, window_bounds = array<i64: 128, 128>}, {pipeline_mode = #tpu.pipeline_mode<synchronous>, transform_indices = @transform_6, window_bounds = array<i64: 1, 128>}, {transform_indices = @transform_7, window_bounds = array<i64: 2, 128>}]} {
    %c0 = arith.constant 0 : index
    %c0_0 = arith.constant 0 : index
    %0 = vector.load %arg1[%c0, %c0_0] : memref<2x64xbf16, #tpu.memory_space<vmem>>, vector<2x64xbf16>
    %c0_1 = arith.constant 0 : index
    %c0_2 = arith.constant 0 : index
    %1 = vector.load %arg2[%c0_1, %c0_2] : memref<64x128xbf16, #tpu.memory_space<vmem>>, vector<64x128xbf16>
    %cst = arith.constant dense<0.000000e+00> : vector<2x128xf32>
    %2 = tpu.matmul %0, %1, %cst {dimension_numbers = #tpu.dot_dimension_numbers<[1], [0], [0], [1], [0, 0, 1, 1], [], []>} : vector<2x64xbf16>, vector<64x128xbf16>, vector<2x128xf32> -> vector<2x128xf32>
    %c0_3 = arith.constant 0 : index
    %c0_4 = arith.constant 0 : index
    %3 = vector.load %arg3[%c0_3, %c0_4] : memref<1x128xf32, #tpu.memory_space<vmem>>, vector<1x128xf32>
    %4 = vector.broadcast %3 : vector<1x128xf32> to vector<2x128xf32>
    %5 = arith.addf %2, %4 : vector<2x128xf32>
    %cst_5 = arith.constant 0.000000e+00 : f32
    %6 = vector.broadcast %cst_5 : f32 to vector<2x128xf32>
    %7 = arith.maximumf %5, %6 : vector<2x128xf32>
    %8 = arith.truncf %7 : vector<2x128xf32> to vector<2x128xbf16>
    %c0_6 = arith.constant 0 : index
    %c0_7 = arith.constant 0 : index
    %9 = vector.load %arg4[%c0_6, %c0_7] : memref<128x128xbf16, #tpu.memory_space<vmem>>, vector<128x128xbf16>
    %cst_8 = arith.constant dense<0.000000e+00> : vector<2x128xf32>
    %10 = tpu.matmul %8, %9, %cst_8 {dimension_numbers = #tpu.dot_dimension_numbers<[1], [0], [0], [1], [0, 0, 1, 1], [], []>} : vector<2x128xbf16>, vector<128x128xbf16>, vector<2x128xf32> -> vector<2x128xf32>
    %c0_9 = arith.constant 0 : index
    %c0_10 = arith.constant 0 : index
    %11 = vector.load %arg5[%c0_9, %c0_10] : memref<1x128xf32, #tpu.memory_space<vmem>>, vector<1x128xf32>
    %12 = vector.broadcast %11 : vector<1x128xf32> to vector<2x128xf32>
    %13 = arith.addf %10, %12 : vector<2x128xf32>
    %cst_11 = arith.constant 0.000000e+00 : f32
    %14 = vector.broadcast %cst_11 : f32 to vector<2x128xf32>
    %15 = arith.maximumf %13, %14 : vector<2x128xf32>
    %16 = arith.truncf %15 : vector<2x128xf32> to vector<2x128xbf16>
    %c0_12 = arith.constant 0 : index
    %c0_13 = arith.constant 0 : index
    %17 = vector.load %arg6[%c0_12, %c0_13] : memref<128x128xbf16, #tpu.memory_space<vmem>>, vector<128x128xbf16>
    %cst_14 = arith.constant dense<0.000000e+00> : vector<2x128xf32>
    %18 = tpu.matmul %16, %17, %cst_14 {dimension_numbers = #tpu.dot_dimension_numbers<[1], [0], [0], [1], [0, 0, 1, 1], [], []>} : vector<2x128xbf16>, vector<128x128xbf16>, vector<2x128xf32> -> vector<2x128xf32>
    %c0_15 = arith.constant 0 : index
    %c0_16 = arith.constant 0 : index
    %19 = vector.load %arg7[%c0_15, %c0_16] : memref<1x128xf32, #tpu.memory_space<vmem>>, vector<1x128xf32>
    %20 = vector.broadcast %19 : vector<1x128xf32> to vector<2x128xf32>
    %21 = arith.addf %18, %20 : vector<2x128xf32>
    %cst_17 = arith.constant dense<0xFF800000> : vector<2xf32>
    %22 = vector.multi_reduction <maximumf>, %21, %cst_17 [1] : vector<2x128xf32> to vector<2xf32>
    %23 = vector.shape_cast %22 : vector<2xf32> to vector<2x1xf32>
    %24 = vector.broadcast %23 : vector<2x1xf32> to vector<2x128xf32>
    %25 = arith.subf %21, %24 : vector<2x128xf32>
    %26 = math.exp %25 : vector<2x128xf32>
    %cst_18 = arith.constant dense<0.000000e+00> : vector<2xf32>
    %27 = vector.multi_reduction <add>, %26, %cst_18 [1] : vector<2x128xf32> to vector<2xf32>
    %28 = vector.shape_cast %27 : vector<2xf32> to vector<2x1xf32>
    %29 = vector.broadcast %28 : vector<2x1xf32> to vector<2x128xf32>
    %30 = arith.divf %26, %29 : vector<2x128xf32>
    %31 = arith.truncf %30 : vector<2x128xf32> to vector<2x128xbf16>
    %c0_19 = arith.constant 0 : index
    %c0_20 = arith.constant 0 : index
    %32 = vector.load %arg8[%c0_19, %c0_20] : memref<2x128xbf16, #tpu.memory_space<vmem>>, vector<2x128xbf16>
    tpu.vector_store %arg8[%c0_19, %c0_20], %31 {strides = array<i32>} : memref<2x128xbf16, #tpu.memory_space<vmem>>, vector<2x128xbf16>,
    return
  }
  func.func @transform_0(%arg0: i32) -> (i32, i32) {
    %c0_i32 = arith.constant 0 : i32
    %c0_i32_0 = arith.constant 0 : i32
    return %arg0, %c0_i32 : i32, i32
  }
  func.func @transform_1(%arg0: i32) -> (i32, i32) {
    %c0_i32 = arith.constant 0 : i32
    %c0_i32_0 = arith.constant 0 : i32
    %c0_i32_1 = arith.constant 0 : i32
    return %c0_i32, %c0_i32_0 : i32, i32
  }
  func.func @transform_2(%arg0: i32) -> (i32, i32) {
    %c0_i32 = arith.constant 0 : i32
    %c0_i32_0 = arith.constant 0 : i32
    %c0_i32_1 = arith.constant 0 : i32
    return %c0_i32, %c0_i32_0 : i32, i32
  }
  func.func @transform_3(%arg0: i32) -> (i32, i32) {
    %c0_i32 = arith.constant 0 : i32
    %c0_i32_0 = arith.constant 0 : i32
    %c0_i32_1 = arith.constant 0 : i32
    return %c0_i32, %c0_i32_0 : i32, i32
  }
  func.func @transform_4(%arg0: i32) -> (i32, i32) {
    %c0_i32 = arith.constant 0 : i32
    %c0_i32_0 = arith.constant 0 : i32
    %c0_i32_1 = arith.constant 0 : i32
    return %c0_i32, %c0_i32_0 : i32, i32
  }
  func.func @transform_5(%arg0: i32) -> (i32, i32) {
    %c0_i32 = arith.constant 0 : i32
    %c0_i32_0 = arith.constant 0 : i32
    %c0_i32_1 = arith.constant 0 : i32
    return %c0_i32, %c0_i32_0 : i32, i32
  }
  func.func @transform_6(%arg0: i32) -> (i32, i32) {
    %c0_i32 = arith.constant 0 : i32
    %c0_i32_0 = arith.constant 0 : i32
    %c0_i32_1 = arith.constant 0 : i32
    return %c0_i32, %c0_i32_0 : i32, i32
  }
  func.func @transform_7(%arg0: i32) -> (i32, i32) {
    %c0_i32 = arith.constant 0 : i32
    %c0_i32_0 = arith.constant 0 : i32
    return %arg0, %c0_i32 : i32, i32
  }
}

</mosaic_0001>

<bundles_post_ra>
// kernel: tpu_custom_call.1
= control target key start
LH: loop header
LB: loop body
LE: loop exit
PB: predicated region body
PF: predicated region fallthrough
CT: control target
= control target key end

     0   :  { %12 = vsyncpa [#allocation3], 0  ;;  %s770_s0 = inlined_call_operand.hbm [shape: bf16[2,64], index: 0, kind: input, shape index: {}]   ;;  %s771_s1 = inlined_call_operand.hbm [shape: bf16[64,128], index: 1, kind: input, shape index: {}]   ;;  %s772_s2 = inlined_call_operand.vmem [shape: f32[1,128], index: 2, kind: input, shape index: {}]   ;;  %s773_s3 = inlined_call_operand.hbm [shape: bf16[128,128], index: 3, kind: input, shape index: {}]   ;;  %s774_s4 = inlined_call_operand.vmem [shape: f32[1,128], index: 4, kind: input, shape index: {}]   ;;  %s775_s5 = inlined_call_operand.hbm [shape: bf16[128,128], index: 5, kind: input, shape index: {}]   ;;  %s776_s6 = inlined_call_operand.vmem [shape: f32[1,128], index: 6, kind: input, shape index: {}]   ;;  %s777_s7 = inlined_call_operand.hbm [shape: bf16[2,128], index: 7, kind: output, shape index: {}]  }
   0x1   :  { %13 = vsyncpa [#allocation6], 0 }
   0x2   :  { %14 = vsyncpa [#allocation9], 0 }
   0x3   :  { %15 = vsyncpa [#allocation4], 0  ;;  %s662_s24 = smov [#allocation5]  }
   0x4   :  { %s31_s25 = sshll.u32 %s662_s24, 4  ;;  %s32_s25 = int_to_ptr.vmem [resolvable:$true] %s31_s25 }
   0x5   :  { %s562_s26 = scalar_lea.vmem %s32_s25, 512  ;;  %p567_p1 = scmp.lt.s32.totalorder %s32_s25, %s32_s25 }
   0x6   :  { %p563_p0 = scmp.ne.s32.totalorder %s32_s25, %s562_s26  ;;  %p568_p2 = scmp.lt.s32.totalorder %s562_s26, %s562_s26 }
   0x8   :  { %p569_p3 = por %p568_p2, %p567_p1 }
   0xa   :  { %p570_p4 = pnand %p569_p3, %p563_p0 }
   0xc   :  { %573 = shalt.err (!%p570_p4)
}
   0xd   :  { %s663_s27 = smov 64   ;;  %s664_s28 = smov 4  }
   0xe   :  { %37 = dma.hbm_to_vmem [thread:$0]  %s771_s1, 512, %s32_s25, [#allocation6], %s663_s27, %s663_s27, %s664_s28  }
   0xf   :  { %s665_s8 = smov [#allocation2]   ;;  %s666_s10 = smov [#allocation7]  }
  0x10   :  { %s22_s9 = sshll.u32 %s665_s8, 4  ;;  %s45_s11 = sshll.u32 %s666_s10, 4  ;;  %s23_s9 = int_to_ptr.vmem [resolvable:$true] %s22_s9  ;;  %s46_s11 = int_to_ptr.vmem [resolvable:$true] %s45_s11 }
  0x11   :  { %s582_s12 = scalar_lea.vmem %s23_s9, 16  ;;  %s586_s13 = scalar_lea.vmem %s23_s9, 32 }
  0x12   :  { %p583_p5 = scmp.ne.s32.totalorder %s23_s9, %s582_s12  ;;  %p587_p6 = scmp.lt.s32.totalorder %s23_s9, %s23_s9 }
  0x13   :  { %p588_p7 = scmp.lt.s32.totalorder %s586_s13, %s582_s12 }
  0x15   :  { %p589_p8 = por %p588_p7, %p587_p6 }
  0x17   :  { %p590_p9 = pnand %p589_p8, %p583_p5 }
  0x19   :  { %593 = shalt.err (!%p590_p9)
}
  0x1a   :  { %25 = dma.hbm_to_vmem [thread:$0]  %s770_s0, 16, %s23_s9, [#allocation3]  }
  0x1b   :  { %s602_s16 = scalar_lea.vmem %s46_s11, 1024  ;;  %p607_p11 = scmp.lt.s32.totalorder %s46_s11, %s46_s11 }
  0x1c   :  { %p603_p10 = scmp.ne.s32.totalorder %s46_s11, %s602_s16  ;;  %p608_p12 = scmp.lt.s32.totalorder %s602_s16, %s602_s16 }
  0x1e   :  { %p609_p13 = por %p608_p12, %p607_p11 }
  0x20   :  { %p610_p0 = pnand %p609_p13, %p603_p10 }
  0x22   :  { %613 = shalt.err (!%p610_p0)
}
  0x23   :  { %51 = dma.hbm_to_vmem [thread:$0]  %s773_s3, 1024, %s46_s11, [#allocation6], %s663_s27, %s663_s27, %s664_s28  }
  0x24   :  { %s667_s18 = smov [#allocation8]  }
  0x25   :  { %s59_s19 = sshll.u32 %s667_s18, 4  ;;  %s60_s19 = int_to_ptr.vmem [resolvable:$true] %s59_s19 }
  0x26   :  { %s622_s20 = scalar_lea.vmem %s60_s19, 1024  ;;  %p627_p2 = scmp.lt.s32.totalorder %s60_s19, %s60_s19 }
  0x27   :  { %p623_p1 = scmp.ne.s32.totalorder %s60_s19, %s622_s20  ;;  %p628_p3 = scmp.lt.s32.totalorder %s622_s20, %s622_s20 }
  0x29   :  { %p629_p4 = por %p628_p3, %p627_p2 }
  0x2b   :  { %p630_p5 = pnand %p629_p4, %p623_p1 }
  0x2d   :  { %633 = shalt.err (!%p630_p5)
}
  0x2e   :  { %65 = dma.hbm_to_vmem [thread:$0]  %s775_s5, 1024, %s60_s19, [#allocation9], %s663_s27, %s663_s27, %s664_s28  }
  0x2f   :  { %654 = dma.done.wait [#allocation3], 16  }
  0x30   :  { %655 = vsyncadd [#allocation3], 4294967280 }
  0x31   :  { %656 = dma.done.wait [#allocation6], 1536  }
  0x32   :  { %657 = vsyncadd [#allocation6], 4294965760 }
  0x33   :  { %658 = dma.done.wait [#allocation9], 1024  }
  0x34   :  { %659 = vsyncadd [#allocation9], 4294966272  ;;  %v668_v0 = vmov 0.0   ;;  %vm669_vm0 = vmmov 0   ;;  %v530_v1 = vld [vmem:[#allocation5 + $0x18] sm:$0xff]   ;;  %v531_v2 = vld [vmem:[#allocation5 + $0x10] sm:$0xff]  }
  0x35   :  { %469 = vmatprep.subr.bf16.mxu0 %v668_v0  ;;  %477 = vmatprep.mubr.msk.bf16.mxu0 %vm669_vm0, %v668_v0  ;;  %v534_v3 = vld [vmem:[#allocation7 + $0x38] sm:$0xff]   ;;  %v532_v4 = vld [vmem:[#allocation5 + $0x8] sm:$0xff]   ;;  %v535_v5 = vld [vmem:[#allocation7 + $0x30] sm:$0xff]   ;;  %vm121_vm1 = vcmask 523264   ;;  %vm391_vm2 = vcmask 1041408  }
  0x36   :  { %481 = vmatprep.subr.bf16.mxu1 %v668_v0  ;;  %497 = vmatprep.mubr.msk.bf16.mxu1 %vm669_vm0, %v668_v0  ;;  %v533_v6 = vld [vmem:[#allocation5] sm:$0xff]   ;;  %v536_v7 = vld [vmem:[#allocation7 + $0x28] sm:$0xff]   ;;  %v81_v8 = vld [vmem:[#allocation2] sm:$0x1] }
  0x37   :  { %470 = vmatpush3.bf16.msra.mxu0 %v530_v1  ;;  %482 = vmatpush3.bf16.msra.mxu1 %v534_v3  ;;  %v537_v9 = vld [vmem:[#allocation7 + $0x20] sm:$0xff]   ;;  %v538_v10 = vld [vmem:[#allocation7 + $0x18] sm:$0xff]   ;;  %v539_v11 = vld [vmem:[#allocation7 + $0x10] sm:$0xff]  }
  0x38   :  { %471 = vmatprep.subr.bf16.mxu0 %v668_v0  ;;  %483 = vmatprep.subr.bf16.mxu1 %v668_v0  ;;  %v540_v12 = vld [vmem:[#allocation7 + $0x8] sm:$0xff]   ;;  %v541_v13 = vld [vmem:[#allocation7] sm:$0xff]   ;;  %v542_v14 = vld [vmem:[#allocation8 + $0x38] sm:$0xff]  }
  0x39   :  { %v543_v15 = vld [vmem:[#allocation8 + $0x30] sm:$0xff]   ;;  %v544_v16 = vld [vmem:[#allocation8 + $0x28] sm:$0xff]   ;;  %v545_v17 = vld [vmem:[#allocation8 + $0x20] sm:$0xff]  }
  0x3a   :  { %v546_v18 = vld [vmem:[#allocation8 + $0x18] sm:$0xff]   ;;  %v547_v19 = vld [vmem:[#allocation8 + $0x10] sm:$0xff]   ;;  %v548_v28 = vld [vmem:[#allocation8 + $0x8] sm:$0xff]  }
  0x3b   :  { %472 = vmatpush3.bf16.msra.mxu0 %v531_v2  ;;  %484 = vmatpush3.bf16.msra.mxu1 %v535_v5  ;;  %v422_v20 = vld [vmem:[%s772_s2] ss:$0 sm:$0xff]  ;;  %v549_v29 = vld [vmem:[#allocation8] sm:$0xff]  }
  0x3c   :  { %473 = vmatprep.subr.bf16.mxu0 %v668_v0  ;;  %485 = vmatprep.subr.bf16.mxu1 %v668_v0  ;;  %v428_v30 = vld [vmem:[%s774_s4] ss:$0 sm:$0xff]  ;;  %s670_s4 = smov [#allocation10]  }
  0x3d   :  { %v437_v38 = vld [vmem:[%s776_s6] ss:$0 sm:$0xff]  ;;  %s411_s6 = sshll.u32 %s670_s4, 4  ;;  %s412_s6 = int_to_ptr.vmem [resolvable:$true] %s411_s6 }
  0x3e   :  { %s634_s25 = scalar_lea.vmem %s412_s6, 16  ;;  %s638_s26 = scalar_lea.vmem %s412_s6, 32 }
  0x3f   :  { %474 = vmatpush3.bf16.msra.mxu0 %v532_v4  ;;  %486 = vmatpush3.bf16.msra.mxu1 %v536_v7  ;;  %p635_p6 = scmp.ne.s32.totalorder %s412_s6, %s634_s25  ;;  %p639_p7 = scmp.lt.s32.totalorder %s412_s6, %s412_s6 }
  0x40   :  { %475 = vmatprep.subr.bf16.mxu0 %v668_v0  ;;  %487 = vmatprep.subr.bf16.mxu1 %v668_v0  ;;  %p640_p8 = scmp.lt.s32.totalorder %s638_s26, %s634_s25 }
  0x42   :  { %p641_p9 = por %p640_p8, %p639_p7 }
  0x43   :  { %476 = vmatpush3.bf16.msra.mxu0 %v533_v6  ;;  %488 = vmatpush3.bf16.msra.mxu1 %v537_v9 }
  0x44   :  { %501 = vmatprep.subr.bf16.mxu0 %v668_v0  ;;  %489 = vmatprep.subr.bf16.mxu1 %v668_v0  ;;  %p642_p10 = pnand %p641_p9, %p635_p6 }
  0x46   :  { %478 = vmatmul.mubr.msk.bf16.vlgmr.msra.gmra.mxu0 %vm121_vm1, %v81_v8 }
  0x47   :  { %517 = vmatprep.mubr.msk.bf16.mxu0 %vm669_vm0, %v668_v0  ;;  %490 = vmatpush3.bf16.msra.mxu1 %v538_v10 }
  0x48   :  { %491 = vmatprep.subr.bf16.mxu1 %v668_v0  ;;  %502 = vmatpush3.bf16.msra.mxu0 %v542_v14 }
  0x49   :  { %503 = vmatprep.subr.bf16.mxu0 %v668_v0 }
  0x4b   :  { %492 = vmatpush3.bf16.msra.mxu1 %v539_v11 }
  0x4c   :  { %493 = vmatprep.subr.bf16.mxu1 %v668_v0  ;;  %504 = vmatpush3.bf16.msra.mxu0 %v543_v15 }
  0x4d   :  { %505 = vmatprep.subr.bf16.mxu0 %v668_v0 }
  0x4f   :  { %494 = vmatpush3.bf16.msra.mxu1 %v540_v12 }
  0x50   :  { %495 = vmatprep.subr.bf16.mxu1 %v668_v0  ;;  %506 = vmatpush3.bf16.msra.mxu0 %v544_v16 }
  0x51   :  { %507 = vmatprep.subr.bf16.mxu0 %v668_v0 }
  0x53   :  { %496 = vmatpush3.bf16.msra.mxu1 %v541_v13 }
  0x54   :  { %508 = vmatpush3.bf16.msra.mxu0 %v545_v17 }
  0x55   :  { %509 = vmatprep.subr.bf16.mxu0 %v668_v0 }
  0x58   :  { %510 = vmatpush3.bf16.msra.mxu0 %v546_v18 }
  0x59   :  { %511 = vmatprep.subr.bf16.mxu0 %v668_v0 }
  0x5c   :  { %512 = vmatpush3.bf16.msra.mxu0 %v547_v19 }
  0x5d   :  { %513 = vmatprep.subr.bf16.mxu0 %v668_v0 }
  0x60   :  { %514 = vmatpush3.bf16.msra.mxu0 %v548_v28 }
  0x61   :  { %515 = vmatprep.subr.bf16.mxu0 %v668_v0 }
  0x64   :  { %516 = vmatpush3.bf16.msra.mxu0 %v549_v29 }
 0x106   :  { %v159_v21 = vpop.f32.mrf.mxu0 }
 0x107   :  { %v160_v22 = vadd.f32 %v422_v20, %v159_v21 }
 0x108   :  { %v479_v23 = vpop.f32.mrf.mxu0 }
 0x109   :  { %v165_v24 = vmax.f32 %v160_v22, 0.0 }
 0x10a   :  { %v162_v25 = vpop.f32.mrf.mxu0 }
 0x10b   :  { %v166_v26 = vpack.c.bf16 %v165_v24, %v165_v24 }
 0x10c   :  { %v480_v27 = vpop.f32.mrf.mxu0 }
 0x10d   :  { %498 = vmatmul.mubr.bf16.vlgmr.msra.gmra.mxu1 %v166_v26 }
 0x1cd   :  { %v272_v31 = vpop.f32.mrf.mxu1 }
 0x1ce   :  { %v273_v32 = vadd.f32 %v428_v30, %v272_v31 }
 0x1cf   :  { %v499_v33 = vpop.f32.mrf.mxu1 }
 0x1d0   :  { %v278_v34 = vmax.f32 %v273_v32, 0.0 }
 0x1d1   :  { %v275_v35 = vpop.f32.mrf.mxu1 }
 0x1d2   :  { %v279_v36 = vpack.c.bf16 %v278_v34, %v278_v34 }
 0x1d3   :  { %v500_v37 = vpop.f32.mrf.mxu1 }
 0x1d4   :  { %518 = vmatmul.mubr.bf16.vlgmr.msra.gmra.mxu0 %v279_v36 }
 0x294   :  { %v385_v39 = vpop.f32.mrf.mxu0 }
 0x295   :  { %v386_v40 = vadd.f32 %v437_v38, %v385_v39 }
 0x296   :  { %v519_v41 = vpop.f32.mrf.mxu0 }
 0x297   :  { %v392_v42 = vsel %vm391_vm2, %v386_v40, -inf }
 0x298   :  { %393 = vmax.xlane.f32.xlu0 %v392_v42  ;;  %v388_v43 = vpop.f32.mrf.mxu0 }
 0x29a   :  { %v520_v44 = vpop.f32.mrf.mxu0 }
 0x321   :  { %v394_v45 = vpop.xlane.xlu0 %393 }
 0x322   :  { %v395_v46 = vsub.f32 %v386_v40, %v394_v45 }
 0x324   :  { %v396_v47 = vmul.f32 1.442695, %v395_v46 }
 0x326   :  { %550 = vpow2.f32 %v396_v47 }
 0x333   :  { %v551_v48 = vpop.eup %550 }
 0x334   :  { %v398_v49 = vsel %vm391_vm2, %v551_v48, 0.0 }
 0x335   :  { %399 = vadd.xlane.f32.xlu0 %v398_v49 }
 0x3be   :  { %v400_v50 = vpop.xlane.xlu0 %399 }
 0x3bf   :  { %552 = vrcp.f32 %v400_v50 }
 0x3cc   :  { %v553_v51 = vpop.eup %552 }
 0x3cd   :  { %v402_v52 = vmul.f32 %v553_v51, %v551_v48 }
 0x3cf   :  { %v403_v53 = vpack.c.bf16 %v402_v52, %v402_v52 }
 0x3d1   :  { %404 = vst [vmem:[#allocation10] sm:$0x1] %v403_v53 }
 0x3d2   :  { %645 = shalt.err (!%p642_p10)
}
 0x3d3   :  { %414 = dma.vmem_to_hbm [thread:$0]  %s412_s6, 16, %s777_s7, [#allocation4]  }
 0x3d4   :  { %660 = dma.done.wait [#allocation4], 16  }
 0x3d5   :  { %661 = vsyncadd [#allocation4], 4294967280 }
 0x3d6   :  { %418 = vsyncpa [#allocation3], 1 }
 0x3d7   :  { %419 = vsyncpa [#allocation6], 1 }
 0x3d8   :  { %420 = vsyncpa [#allocation9], 1 }
 0x3d9   :  { %421 = vsyncpa [#allocation4], 1 }

</bundles_post_ra>
